<compile_context>
chip_gen: v7x
topology: tpu7x:2x2x1
jax: 0.10.0
libtpu: 0.0.40
codegen_flags: <defaults>
</compile_context>

<pallas_src>
import math

import jax
import jax.numpy as jnp
import numpy as np
from jax import lax
from jax.experimental import pallas as pl
from jax.experimental.pallas import tpu as pltpu

# Small, module-consistent shapes.
B, LX, LY, C, H = 2, 8, 16, 32, 4          # batch, query len, key len, hdim, heads
DH = C // H                                 # head dim
NEG_INF = -1.0e9                            # large-negative key-padding mask


def _layernorm(v, gamma, beta, eps=1e-5):
    mu = jnp.mean(v, axis=-1, keepdims=True)
    d = v - mu
    var = jnp.mean(d * d, axis=-1, keepdims=True)
    return d * lax.rsqrt(var + eps) * gamma + beta


def _linear(x, W, b):
    # x: [M, in], W: [out, in] (PyTorch Linear layout), b: [1, out]
    y = lax.dot_general(x, W, (((1,), (1,)), ((), ())),
                        preferred_element_type=jnp.float32)
    return y + b


def cross_attention_kernel(x_ref, y_ref, mask_ref,
                           Wq_ref, bq_ref,
                           Wkv_ref, bkv_ref,
                           Wo_ref, bo_ref,
                           g0_ref, b0_ref,
                           Wlin_ref, blin_ref,
                           g1_ref, b1_ref,
                           out_ref):
    x = x_ref[0]                               # [Lx, C]
    y = y_ref[0]                               # [Ly, C]
    mask = mask_ref[0]                         # [1, Ly]  (1 = valid, 0 = padded)

    # Fused projections (q_proj∘in_proj_q and kv_proj∘in_proj_kv pre-composed).
    q = _linear(x, Wq_ref[...], bq_ref[...])           # [Lx, C]
    kv = _linear(y, Wkv_ref[...], bkv_ref[...])        # [Ly, 2C]
    k = kv[:, :C]
    v = kv[:, C:]

    # Additive key-padding mask, computed once for all heads.
    neg = jnp.where(mask == 0.0, NEG_INF, 0.0)         # [1, Ly]

    scale = 1.0 / math.sqrt(DH)
    ctx_parts = []
    attn_sum = jnp.zeros((LX, LY), jnp.float32)
    for h in range(H):                                  # static unroll, H=4
        sl = slice(h * DH, (h + 1) * DH)
        qh, kh, vh = q[:, sl], k[:, sl], v[:, sl]       # [Lx,Dh],[Ly,Dh],[Ly,Dh]
        s = lax.dot_general(qh, kh, (((1,), (1,)), ((), ())),
                            preferred_element_type=jnp.float32) * scale
        s = s + neg                                     # [Lx, Ly]
        m = jnp.max(s, axis=-1, keepdims=True)
        e = jnp.exp(s - m)
        denom = jnp.sum(e, axis=-1, keepdims=True)
        a = e * pl.reciprocal(denom, approx=True)       # softmax, EUP reciprocal
        attn_sum = attn_sum + a
        ctx_parts.append(jnp.dot(a, vh, preferred_element_type=jnp.float32))

    ctx = jnp.concatenate(ctx_parts, axis=-1)           # [Lx, C]
    attn_avg = attn_sum * (1.0 / H)                     # head-averaged weights

    # out_proj + residual + LayerNorm
    q_att = _linear(ctx, Wo_ref[...], bo_ref[...])      # [Lx, C]
    x1 = _layernorm(x + q_att, g0_ref[...], b0_ref[...])

    # Linear -> ReLU -> residual -> LayerNorm1
    upd = jnp.maximum(_linear(x1, Wlin_ref[...], blin_ref[...]), 0.0)
    x2 = _layernorm(x1 + upd, g1_ref[...], b1_ref[...])

    # Single lane-dense packed write: [Lx, C + Ly]
    out_ref[0] = jnp.concatenate([x2, attn_avg], axis=-1)


def cross_attention(x, y, mask, params):
    """x: [B, Lx, C]; y: [B, Ly, C]; mask: [B, Ly] (1 valid, 0 padded)."""
    Bv, Lx, Cv = x.shape
    Ly = y.shape[1]

    # Pre-compose consecutive linears (one-time, outside the kernel):
    #   q' = in_proj_q(q_proj(x)),  [k', v'] = in_proj_{k,v}(kv_proj(y))
    Wqi, Wki, Wvi = jnp.split(params['W_in'], 3, axis=0)
    bqi, bki, bvi = jnp.split(params['b_in'], 3, axis=0)
    Wk_p, Wv_p = params['Wkv_proj'][:Cv], params['Wkv_proj'][Cv:]
    bk_p, bv_p = params['bkv_proj'][:Cv], params['bkv_proj'][Cv:]

    Wq_eff = Wqi @ params['Wq_proj']
    bq_eff = Wqi @ params['bq_proj'] + bqi
    Wk_eff = Wki @ Wk_p
    bk_eff = Wki @ bk_p + bki
    Wv_eff = Wvi @ Wv_p
    bv_eff = Wvi @ bv_p + bvi
    Wkv_eff = jnp.concatenate([Wk_eff, Wv_eff], axis=0)       # [2C, C]
    bkv_eff = jnp.concatenate([bk_eff, bv_eff])               # [2C]

    mask3 = mask.astype(jnp.float32).reshape(Bv, 1, Ly)

    def full(shape):
        return pl.BlockSpec(shape, lambda b, _n=len(shape): (0,) * _n)

    packed = pl.pallas_call(
        cross_attention_kernel,
        out_shape=jax.ShapeDtypeStruct((Bv, Lx, Cv + Ly), jnp.float32),
        grid=(Bv,),
        in_specs=[
            pl.BlockSpec((1, Lx, Cv), lambda b: (b, 0, 0)),   # x
            pl.BlockSpec((1, Ly, Cv), lambda b: (b, 0, 0)),   # y
            pl.BlockSpec((1, 1, Ly), lambda b: (b, 0, 0)),    # mask
            full((Cv, Cv)), full((1, Cv)),                    # fused Q proj
            full((2 * Cv, Cv)), full((1, 2 * Cv)),            # fused KV proj
            full((Cv, Cv)), full((1, Cv)),                    # out_proj
            full((1, Cv)), full((1, Cv)),                     # norm gamma/beta
            full((Cv, Cv)), full((1, Cv)),                    # linear
            full((1, Cv)), full((1, Cv)),                     # norm1 gamma/beta
        ],
        out_specs=pl.BlockSpec((1, Lx, Cv + Ly), lambda b: (b, 0, 0)),
        compiler_params=pltpu.CompilerParams(
            dimension_semantics=("parallel",)),
    )(x.astype(jnp.float32), y.astype(jnp.float32), mask3,
      Wq_eff, bq_eff[None, :],
      Wkv_eff, bkv_eff[None, :],
      params['Wo'], params['bo'][None, :],
      params['g0'][None, :], params['beta0'][None, :],
      params['Wlin'], params['blin'][None, :],
      params['g1'][None, :], params['beta1'][None, :])

    return packed[..., :Cv], packed[..., Cv:]


def init_params(key):
    """Deterministic PyTorch-like uniform(-1/sqrt(fan_in)) init."""
    def lin(k, out_dim, in_dim):
        bound = 1.0 / math.sqrt(in_dim)
        kw, kb = jax.random.split(k)
        W = jax.random.uniform(kw, (out_dim, in_dim), jnp.float32, -bound, bound)
        b = jax.random.uniform(kb, (out_dim,), jnp.float32, -bound, bound)
        return W, b

    ks = jax.random.split(key, 6)
    Wq_proj, bq_proj = lin(ks[0], C, C)
    Wkv_proj, bkv_proj = lin(ks[1], 2 * C, C)
    W_in, b_in = lin(ks[2], 3 * C, C)          # MHA in_proj
    Wo, bo = lin(ks[3], C, C)                  # MHA out_proj
    Wlin, blin = lin(ks[4], C, C)              # FFN linear
    kg = jax.random.split(ks[5], 4)
    g0 = 1.0 + 0.1 * jax.random.normal(kg[0], (C,), jnp.float32)
    beta0 = 0.1 * jax.random.normal(kg[1], (C,), jnp.float32)
    g1 = 1.0 + 0.1 * jax.random.normal(kg[2], (C,), jnp.float32)
    beta1 = 0.1 * jax.random.normal(kg[3], (C,), jnp.float32)
    return dict(Wq_proj=Wq_proj, bq_proj=bq_proj,
                Wkv_proj=Wkv_proj, bkv_proj=bkv_proj,
                W_in=W_in, b_in=b_in, Wo=Wo, bo=bo,
                Wlin=Wlin, blin=blin,
                g0=g0, beta0=beta0, g1=g1, beta1=beta1)


def ref_forward(x, y, mask, p):
    """Pure-JAX reference mirroring the PyTorch forward (eval mode, no fusion)."""
    Bv, Lx, Cv = x.shape
    Ly = y.shape[1]
    q = x @ p['Wq_proj'].T + p['bq_proj']
    kv = y @ p['Wkv_proj'].T + p['bkv_proj']
    k, v = kv[..., :Cv], kv[..., Cv:]
    Wqi, Wki, Wvi = jnp.split(p['W_in'], 3, axis=0)
    bqi, bki, bvi = jnp.split(p['b_in'], 3, axis=0)
    q2 = q @ Wqi.T + bqi
    k2 = k @ Wki.T + bki
    v2 = v @ Wvi.T + bvi
    Dh = Cv // H
    qh = q2.reshape(Bv, Lx, H, Dh).transpose(0, 2, 1, 3)
    kh = k2.reshape(Bv, Ly, H, Dh).transpose(0, 2, 1, 3)
    vh = v2.reshape(Bv, Ly, H, Dh).transpose(0, 2, 1, 3)
    s = jnp.einsum('bhqd,bhkd->bhqk', qh, kh) / math.sqrt(Dh)
    s = jnp.where((mask == 0.0)[:, None, None, :], NEG_INF, s)
    a = jax.nn.softmax(s, axis=-1)
    ctx = jnp.einsum('bhqk,bhkd->bhqd', a, vh).transpose(0, 2, 1, 3)
    ctx = ctx.reshape(Bv, Lx, Cv)
    q_att = ctx @ p['Wo'].T + p['bo']

    def ln(t, g, b, eps=1e-5):
        mu = t.mean(-1, keepdims=True)
        var = ((t - mu) ** 2).mean(-1, keepdims=True)
        return (t - mu) / jnp.sqrt(var + eps) * g + b

    x1 = ln(x + q_att, p['g0'], p['beta0'])
    upd = jax.nn.relu(x1 @ p['Wlin'].T + p['blin'])
    x2 = ln(x1 + upd, p['g1'], p['beta1'])
    return x2, a.mean(axis=1)


if __name__ == "__main__":
    key = jax.random.PRNGKey(0)
    kp, kx, ky = jax.random.split(key, 3)

    params = init_params(kp)
    x = jax.random.normal(kx, (B, LX, C), jnp.float32)
    y = jax.random.normal(ky, (B, LY, C), jnp.float32)
    # mask: batch 0 fully valid, batch 1 has the last 5 key positions padded
    mask = jnp.ones((B, LY), jnp.float32).at[1, 11:].set(0.0)

    x_out, attn = cross_attention(x, y, mask, params)
    jax.block_until_ready((x_out, attn))

    ref_x, ref_attn = ref_forward(x, y, mask, params)
    np.testing.assert_allclose(np.asarray(x_out), np.asarray(ref_x),
                               rtol=2e-3, atol=2e-3)
    np.testing.assert_allclose(np.asarray(attn), np.asarray(ref_attn),
                               rtol=2e-3, atol=2e-3)
    assert x_out.shape == (B, LX, C) and attn.shape == (B, LX, LY)
    print("KERNEL_OK")
</pallas_src>

<mosaic_0001>
module attributes {stable_mosaic.version = 11 : i64} {
  func.func @cross_attention_kernel(%arg0: i32, %arg1: memref<1x8x32xf32, #tpu.memory_space<vmem>>, %arg2: memref<1x16x32xf32, #tpu.memory_space<vmem>>, %arg3: memref<1x1x16xf32, #tpu.memory_space<vmem>>, %arg4: memref<32x32xf32, #tpu.memory_space<vmem>>, %arg5: memref<1x32xf32, #tpu.memory_space<vmem>>, %arg6: memref<64x32xf32, #tpu.memory_space<vmem>>, %arg7: memref<1x64xf32, #tpu.memory_space<vmem>>, %arg8: memref<32x32xf32, #tpu.memory_space<vmem>>, %arg9: memref<1x32xf32, #tpu.memory_space<vmem>>, %arg10: memref<1x32xf32, #tpu.memory_space<vmem>>, %arg11: memref<1x32xf32, #tpu.memory_space<vmem>>, %arg12: memref<32x32xf32, #tpu.memory_space<vmem>>, %arg13: memref<1x32xf32, #tpu.memory_space<vmem>>, %arg14: memref<1x32xf32, #tpu.memory_space<vmem>>, %arg15: memref<1x32xf32, #tpu.memory_space<vmem>>, %arg16: memref<1x8x48xf32, #tpu.memory_space<vmem>>) attributes {dimension_semantics = [#tpu.dimension_semantics<parallel>], iteration_bounds = array<i64: 2>, scalar_prefetch = 0 : i64, scratch_operands = 0 : i64, tpu.core_type = #tpu.core_type<tc>, window_params = [{transform_indices = @transform_0, window_bounds = array<i64: 1, 8, 32>}, {transform_indices = @transform_1, window_bounds = array<i64: 1, 16, 32>}, {transform_indices = @transform_2, window_bounds = array<i64: 1, 1, 16>}, {pipeline_mode = #tpu.pipeline_mode<synchronous>, transform_indices = @transform_3, window_bounds = array<i64: 32, 32>}, {pipeline_mode = #tpu.pipeline_mode<synchronous>, transform_indices = @transform_4, window_bounds = array<i64: 1, 32>}, {pipeline_mode = #tpu.pipeline_mode<synchronous>, transform_indices = @transform_5, window_bounds = array<i64: 64, 32>}, {pipeline_mode = #tpu.pipeline_mode<synchronous>, transform_indices = @transform_6, window_bounds = array<i64: 1, 64>}, {pipeline_mode = #tpu.pipeline_mode<synchronous>, transform_indices = @transform_7, window_bounds = array<i64: 32, 32>}, {pipeline_mode = #tpu.pipeline_mode<synchronous>, transform_indices = @transform_8, window_bounds = array<i64: 1, 32>}, {pipeline_mode = #tpu.pipeline_mode<synchronous>, transform_indices = @transform_9, window_bounds = array<i64: 1, 32>}, {pipeline_mode = #tpu.pipeline_mode<synchronous>, transform_indices = @transform_10, window_bounds = array<i64: 1, 32>}, {pipeline_mode = #tpu.pipeline_mode<synchronous>, transform_indices = @transform_11, window_bounds = array<i64: 32, 32>}, {pipeline_mode = #tpu.pipeline_mode<synchronous>, transform_indices = @transform_12, window_bounds = array<i64: 1, 32>}, {pipeline_mode = #tpu.pipeline_mode<synchronous>, transform_indices = @transform_13, window_bounds = array<i64: 1, 32>}, {pipeline_mode = #tpu.pipeline_mode<synchronous>, transform_indices = @transform_14, window_bounds = array<i64: 1, 32>}, {transform_indices = @transform_15, window_bounds = array<i64: 1, 8, 48>}]} {
    %c0 = arith.constant 0 : index
    %c0_0 = arith.constant 0 : index
    %c0_1 = arith.constant 0 : index
    %0 = vector.load %arg1[%c0, %c0_0, %c0_1] : memref<1x8x32xf32, #tpu.memory_space<vmem>>, vector<1x8x32xf32>
    %1 = vector.shape_cast %0 : vector<1x8x32xf32> to vector<8x32xf32>
    %c0_2 = arith.constant 0 : index
    %c0_3 = arith.constant 0 : index
    %c0_4 = arith.constant 0 : index
    %2 = vector.load %arg2[%c0_2, %c0_3, %c0_4] : memref<1x16x32xf32, #tpu.memory_space<vmem>>, vector<1x16x32xf32>
    %3 = vector.shape_cast %2 : vector<1x16x32xf32> to vector<16x32xf32>
    %c0_5 = arith.constant 0 : index
    %c0_6 = arith.constant 0 : index
    %c0_7 = arith.constant 0 : index
    %4 = vector.load %arg3[%c0_5, %c0_6, %c0_7] : memref<1x1x16xf32, #tpu.memory_space<vmem>>, vector<1x1x16xf32>
    %5 = vector.shape_cast %4 : vector<1x1x16xf32> to vector<1x16xf32>
    %c0_8 = arith.constant 0 : index
    %c0_9 = arith.constant 0 : index
    %6 = vector.load %arg4[%c0_8, %c0_9] : memref<32x32xf32, #tpu.memory_space<vmem>>, vector<32x32xf32>
    %c0_10 = arith.constant 0 : index
    %c0_11 = arith.constant 0 : index
    %7 = vector.load %arg5[%c0_10, %c0_11] : memref<1x32xf32, #tpu.memory_space<vmem>>, vector<1x32xf32>
    %cst = arith.constant dense<0.000000e+00> : vector<8x32xf32>
    %8 = tpu.matmul %1, %6, %cst {dimension_numbers = #tpu.dot_dimension_numbers<[1], [1], [0], [0], [0, 0, 1, 0], [], []>} : vector<8x32xf32>, vector<32x32xf32>, vector<8x32xf32> -> vector<8x32xf32>
    %9 = vector.broadcast %7 : vector<1x32xf32> to vector<8x32xf32>
    %10 = arith.addf %8, %9 : vector<8x32xf32>
    %c0_12 = arith.constant 0 : index
    %c0_13 = arith.constant 0 : index
    %11 = vector.load %arg6[%c0_12, %c0_13] : memref<64x32xf32, #tpu.memory_space<vmem>>, vector<64x32xf32>
    %c0_14 = arith.constant 0 : index
    %c0_15 = arith.constant 0 : index
    %12 = vector.load %arg7[%c0_14, %c0_15] : memref<1x64xf32, #tpu.memory_space<vmem>>, vector<1x64xf32>
    %cst_16 = arith.constant dense<0.000000e+00> : vector<16x64xf32>
    %13 = tpu.matmul %3, %11, %cst_16 {dimension_numbers = #tpu.dot_dimension_numbers<[1], [1], [0], [0], [0, 0, 1, 0], [], []>} : vector<16x32xf32>, vector<64x32xf32>, vector<16x64xf32> -> vector<16x64xf32>
    %14 = vector.broadcast %12 : vector<1x64xf32> to vector<16x64xf32>
    %15 = arith.addf %13, %14 : vector<16x64xf32>
    %16 = vector.extract_strided_slice %15 {offsets = [0, 0], sizes = [16, 32], strides = [1, 1]} : vector<16x64xf32> to vector<16x32xf32>
    %17 = vector.extract_strided_slice %15 {offsets = [0, 32], sizes = [16, 32], strides = [1, 1]} : vector<16x64xf32> to vector<16x32xf32>
    %cst_17 = arith.constant 0.000000e+00 : f32
    %18 = vector.broadcast %cst_17 : f32 to vector<1x16xf32>
    %19 = arith.cmpf oeq, %5, %18 : vector<1x16xf32>
    %cst_18 = arith.constant -1.000000e+09 : f32
    %cst_19 = arith.constant 0.000000e+00 : f32
    %20 = vector.broadcast %cst_18 : f32 to vector<1x16xf32>
    %21 = vector.broadcast %cst_19 : f32 to vector<1x16xf32>
    %22 = arith.select %19, %20, %21 : vector<1x16xi1>, vector<1x16xf32>
    %cst_20 = arith.constant 0.000000e+00 : f32
    %23 = vector.broadcast %cst_20 : f32 to vector<8x16xf32>
    %24 = vector.extract_strided_slice %10 {offsets = [0, 0], sizes = [8, 8], strides = [1, 1]} : vector<8x32xf32> to vector<8x8xf32>
    %25 = vector.extract_strided_slice %16 {offsets = [0, 0], sizes = [16, 8], strides = [1, 1]} : vector<16x32xf32> to vector<16x8xf32>
    %26 = vector.extract_strided_slice %17 {offsets = [0, 0], sizes = [16, 8], strides = [1, 1]} : vector<16x32xf32> to vector<16x8xf32>
    %cst_21 = arith.constant dense<0.000000e+00> : vector<8x16xf32>
    %27 = tpu.matmul %24, %25, %cst_21 {dimension_numbers = #tpu.dot_dimension_numbers<[1], [1], [0], [0], [0, 0, 1, 0], [], []>} : vector<8x8xf32>, vector<16x8xf32>, vector<8x16xf32> -> vector<8x16xf32>
    %cst_22 = arith.constant 0.353553385 : f32
    %28 = vector.broadcast %cst_22 : f32 to vector<8x16xf32>
    %29 = arith.mulf %27, %28 : vector<8x16xf32>
    %30 = vector.broadcast %22 : vector<1x16xf32> to vector<8x16xf32>
    %31 = arith.addf %29, %30 : vector<8x16xf32>
    %cst_23 = arith.constant dense<0xFF800000> : vector<8xf32>
    %32 = vector.multi_reduction <maximumf>, %31, %cst_23 [1] : vector<8x16xf32> to vector<8xf32>
    %33 = vector.shape_cast %32 : vector<8xf32> to vector<8x1xf32>
    %34 = vector.broadcast %33 : vector<8x1xf32> to vector<8x16xf32>
    %35 = arith.subf %31, %34 : vector<8x16xf32>
    %36 = math.exp %35 : vector<8x16xf32>
    %cst_24 = arith.constant dense<0.000000e+00> : vector<8xf32>
    %37 = vector.multi_reduction <add>, %36, %cst_24 [1] : vector<8x16xf32> to vector<8xf32>
    %38 = vector.shape_cast %37 : vector<8xf32> to vector<8x1xf32>
    %39 = tpu.reciprocal %38 {approx = true} : vector<8x1xf32> -> vector<8x1xf32>
    %40 = vector.broadcast %39 : vector<8x1xf32> to vector<8x16xf32>
    %41 = arith.mulf %36, %40 : vector<8x16xf32>
    %42 = arith.addf %23, %41 : vector<8x16xf32>
    %cst_25 = arith.constant dense<0.000000e+00> : vector<8x8xf32>
    %43 = tpu.matmul %41, %26, %cst_25 {dimension_numbers = #tpu.dot_dimension_numbers<[1], [0], [0], [1], [0, 0, 1, 1], [], []>} : vector<8x16xf32>, vector<16x8xf32>, vector<8x8xf32> -> vector<8x8xf32>
    %44 = vector.extract_strided_slice %10 {offsets = [0, 8], sizes = [8, 8], strides = [1, 1]} : vector<8x32xf32> to vector<8x8xf32>
    %45 = vector.extract_strided_slice %16 {offsets = [0, 8], sizes = [16, 8], strides = [1, 1]} : vector<16x32xf32> to vector<16x8xf32>
    %46 = vector.extract_strided_slice %17 {offsets = [0, 8], sizes = [16, 8], strides = [1, 1]} : vector<16x32xf32> to vector<16x8xf32>
    %cst_26 = arith.constant dense<0.000000e+00> : vector<8x16xf32>
    %47 = tpu.matmul %44, %45, %cst_26 {dimension_numbers = #tpu.dot_dimension_numbers<[1], [1], [0], [0], [0, 0, 1, 0], [], []>} : vector<8x8xf32>, vector<16x8xf32>, vector<8x16xf32> -> vector<8x16xf32>
    %cst_27 = arith.constant 0.353553385 : f32
    %48 = vector.broadcast %cst_27 : f32 to vector<8x16xf32>
    %49 = arith.mulf %47, %48 : vector<8x16xf32>
    %50 = vector.broadcast %22 : vector<1x16xf32> to vector<8x16xf32>
    %51 = arith.addf %49, %50 : vector<8x16xf32>
    %cst_28 = arith.constant dense<0xFF800000> : vector<8xf32>
    %52 = vector.multi_reduction <maximumf>, %51, %cst_28 [1] : vector<8x16xf32> to vector<8xf32>
    %53 = vector.shape_cast %52 : vector<8xf32> to vector<8x1xf32>
    %54 = vector.broadcast %53 : vector<8x1xf32> to vector<8x16xf32>
    %55 = arith.subf %51, %54 : vector<8x16xf32>
    %56 = math.exp %55 : vector<8x16xf32>
    %cst_29 = arith.constant dense<0.000000e+00> : vector<8xf32>
    %57 = vector.multi_reduction <add>, %56, %cst_29 [1] : vector<8x16xf32> to vector<8xf32>
    %58 = vector.shape_cast %57 : vector<8xf32> to vector<8x1xf32>
    %59 = tpu.reciprocal %58 {approx = true} : vector<8x1xf32> -> vector<8x1xf32>
    %60 = vector.broadcast %59 : vector<8x1xf32> to vector<8x16xf32>
    %61 = arith.mulf %56, %60 : vector<8x16xf32>
    %62 = arith.addf %42, %61 : vector<8x16xf32>
    %cst_30 = arith.constant dense<0.000000e+00> : vector<8x8xf32>
    %63 = tpu.matmul %61, %46, %cst_30 {dimension_numbers = #tpu.dot_dimension_numbers<[1], [0], [0], [1], [0, 0, 1, 1], [], []>} : vector<8x16xf32>, vector<16x8xf32>, vector<8x8xf32> -> vector<8x8xf32>
    %64 = vector.extract_strided_slice %10 {offsets = [0, 16], sizes = [8, 8], strides = [1, 1]} : vector<8x32xf32> to vector<8x8xf32>
    %65 = vector.extract_strided_slice %16 {offsets = [0, 16], sizes = [16, 8], strides = [1, 1]} : vector<16x32xf32> to vector<16x8xf32>
    %66 = vector.extract_strided_slice %17 {offsets = [0, 16], sizes = [16, 8], strides = [1, 1]} : vector<16x32xf32> to vector<16x8xf32>
    %cst_31 = arith.constant dense<0.000000e+00> : vector<8x16xf32>
    %67 = tpu.matmul %64, %65, %cst_31 {dimension_numbers = #tpu.dot_dimension_numbers<[1], [1], [0], [0], [0, 0, 1, 0], [], []>} : vector<8x8xf32>, vector<16x8xf32>, vector<8x16xf32> -> vector<8x16xf32>
    %cst_32 = arith.constant 0.353553385 : f32
    %68 = vector.broadcast %cst_32 : f32 to vector<8x16xf32>
    %69 = arith.mulf %67, %68 : vector<8x16xf32>
    %70 = vector.broadcast %22 : vector<1x16xf32> to vector<8x16xf32>
    %71 = arith.addf %69, %70 : vector<8x16xf32>
    %cst_33 = arith.constant dense<0xFF800000> : vector<8xf32>
    %72 = vector.multi_reduction <maximumf>, %71, %cst_33 [1] : vector<8x16xf32> to vector<8xf32>
    %73 = vector.shape_cast %72 : vector<8xf32> to vector<8x1xf32>
    %74 = vector.broadcast %73 : vector<8x1xf32> to vector<8x16xf32>
    %75 = arith.subf %71, %74 : vector<8x16xf32>
    %76 = math.exp %75 : vector<8x16xf32>
    %cst_34 = arith.constant dense<0.000000e+00> : vector<8xf32>
    %77 = vector.multi_reduction <add>, %76, %cst_34 [1] : vector<8x16xf32> to vector<8xf32>
    %78 = vector.shape_cast %77 : vector<8xf32> to vector<8x1xf32>
    %79 = tpu.reciprocal %78 {approx = true} : vector<8x1xf32> -> vector<8x1xf32>
    %80 = vector.broadcast %79 : vector<8x1xf32> to vector<8x16xf32>
    %81 = arith.mulf %76, %80 : vector<8x16xf32>
    %82 = arith.addf %62, %81 : vector<8x16xf32>
    %cst_35 = arith.constant dense<0.000000e+00> : vector<8x8xf32>
    %83 = tpu.matmul %81, %66, %cst_35 {dimension_numbers = #tpu.dot_dimension_numbers<[1], [0], [0], [1], [0, 0, 1, 1], [], []>} : vector<8x16xf32>, vector<16x8xf32>, vector<8x8xf32> -> vector<8x8xf32>
    %84 = vector.extract_strided_slice %10 {offsets = [0, 24], sizes = [8, 8], strides = [1, 1]} : vector<8x32xf32> to vector<8x8xf32>
    %85 = vector.extract_strided_slice %16 {offsets = [0, 24], sizes = [16, 8], strides = [1, 1]} : vector<16x32xf32> to vector<16x8xf32>
    %86 = vector.extract_strided_slice %17 {offsets = [0, 24], sizes = [16, 8], strides = [1, 1]} : vector<16x32xf32> to vector<16x8xf32>
    %cst_36 = arith.constant dense<0.000000e+00> : vector<8x16xf32>
    %87 = tpu.matmul %84, %85, %cst_36 {dimension_numbers = #tpu.dot_dimension_numbers<[1], [1], [0], [0], [0, 0, 1, 0], [], []>} : vector<8x8xf32>, vector<16x8xf32>, vector<8x16xf32> -> vector<8x16xf32>
    %cst_37 = arith.constant 0.353553385 : f32
    %88 = vector.broadcast %cst_37 : f32 to vector<8x16xf32>
    %89 = arith.mulf %87, %88 : vector<8x16xf32>
    %90 = vector.broadcast %22 : vector<1x16xf32> to vector<8x16xf32>
    %91 = arith.addf %89, %90 : vector<8x16xf32>
    %cst_38 = arith.constant dense<0xFF800000> : vector<8xf32>
    %92 = vector.multi_reduction <maximumf>, %91, %cst_38 [1] : vector<8x16xf32> to vector<8xf32>
    %93 = vector.shape_cast %92 : vector<8xf32> to vector<8x1xf32>
    %94 = vector.broadcast %93 : vector<8x1xf32> to vector<8x16xf32>
    %95 = arith.subf %91, %94 : vector<8x16xf32>
    %96 = math.exp %95 : vector<8x16xf32>
    %cst_39 = arith.constant dense<0.000000e+00> : vector<8xf32>
    %97 = vector.multi_reduction <add>, %96, %cst_39 [1] : vector<8x16xf32> to vector<8xf32>
    %98 = vector.shape_cast %97 : vector<8xf32> to vector<8x1xf32>
    %99 = tpu.reciprocal %98 {approx = true} : vector<8x1xf32> -> vector<8x1xf32>
    %100 = vector.broadcast %99 : vector<8x1xf32> to vector<8x16xf32>
    %101 = arith.mulf %96, %100 : vector<8x16xf32>
    %102 = arith.addf %82, %101 : vector<8x16xf32>
    %cst_40 = arith.constant dense<0.000000e+00> : vector<8x8xf32>
    %103 = tpu.matmul %101, %86, %cst_40 {dimension_numbers = #tpu.dot_dimension_numbers<[1], [0], [0], [1], [0, 0, 1, 1], [], []>} : vector<8x16xf32>, vector<16x8xf32>, vector<8x8xf32> -> vector<8x8xf32>
    %104 = tpu.concatenate %43, %63, %83, %103 in 1 : vector<8x8xf32>, vector<8x8xf32>, vector<8x8xf32>, vector<8x8xf32> -> vector<8x32xf32>
    %cst_41 = arith.constant 2.500000e-01 : f32
    %105 = vector.broadcast %cst_41 : f32 to vector<8x16xf32>
    %106 = arith.mulf %102, %105 : vector<8x16xf32>
    %c0_42 = arith.constant 0 : index
    %c0_43 = arith.constant 0 : index
    %107 = vector.load %arg8[%c0_42, %c0_43] : memref<32x32xf32, #tpu.memory_space<vmem>>, vector<32x32xf32>
    %c0_44 = arith.constant 0 : index
    %c0_45 = arith.constant 0 : index
    %108 = vector.load %arg9[%c0_44, %c0_45] : memref<1x32xf32, #tpu.memory_space<vmem>>, vector<1x32xf32>
    %cst_46 = arith.constant dense<0.000000e+00> : vector<8x32xf32>
    %109 = tpu.matmul %104, %107, %cst_46 {dimension_numbers = #tpu.dot_dimension_numbers<[1], [1], [0], [0], [0, 0, 1, 0], [], []>} : vector<8x32xf32>, vector<32x32xf32>, vector<8x32xf32> -> vector<8x32xf32>
    %110 = vector.broadcast %108 : vector<1x32xf32> to vector<8x32xf32>
    %111 = arith.addf %109, %110 : vector<8x32xf32>
    %112 = arith.addf %1, %111 : vector<8x32xf32>
    %c0_47 = arith.constant 0 : index
    %c0_48 = arith.constant 0 : index
    %113 = vector.load %arg10[%c0_47, %c0_48] : memref<1x32xf32, #tpu.memory_space<vmem>>, vector<1x32xf32>
    %c0_49 = arith.constant 0 : index
    %c0_50 = arith.constant 0 : index
    %114 = vector.load %arg11[%c0_49, %c0_50] : memref<1x32xf32, #tpu.memory_space<vmem>>, vector<1x32xf32>
    %cst_51 = arith.constant dense<0.000000e+00> : vector<8xf32>
    %115 = vector.multi_reduction <add>, %112, %cst_51 [1] : vector<8x32xf32> to vector<8xf32>
    %116 = vector.shape_cast %115 : vector<8xf32> to vector<8x1xf32>
    %cst_52 = arith.constant 3.200000e+01 : f32
    %117 = vector.broadcast %cst_52 : f32 to vector<8x1xf32>
    %118 = arith.divf %116, %117 : vector<8x1xf32>
    %119 = vector.broadcast %118 : vector<8x1xf32> to vector<8x32xf32>
    %120 = arith.subf %112, %119 : vector<8x32xf32>
    %121 = arith.mulf %120, %120 : vector<8x32xf32>
    %cst_53 = arith.constant dense<0.000000e+00> : vector<8xf32>
    %122 = vector.multi_reduction <add>, %121, %cst_53 [1] : vector<8x32xf32> to vector<8xf32>
    %123 = vector.shape_cast %122 : vector<8xf32> to vector<8x1xf32>
    %cst_54 = arith.constant 3.200000e+01 : f32
    %124 = vector.broadcast %cst_54 : f32 to vector<8x1xf32>
    %125 = arith.divf %123, %124 : vector<8x1xf32>
    %cst_55 = arith.constant 9.99999974E-6 : f32
    %126 = vector.broadcast %cst_55 : f32 to vector<8x1xf32>
    %127 = arith.addf %125, %126 : vector<8x1xf32>
    %128 = math.rsqrt %127 : vector<8x1xf32>
    %129 = vector.broadcast %128 : vector<8x1xf32> to vector<8x32xf32>
    %130 = arith.mulf %120, %129 : vector<8x32xf32>
    %131 = vector.broadcast %113 : vector<1x32xf32> to vector<8x32xf32>
    %132 = arith.mulf %130, %131 : vector<8x32xf32>
    %133 = vector.broadcast %114 : vector<1x32xf32> to vector<8x32xf32>
    %134 = arith.addf %132, %133 : vector<8x32xf32>
    %c0_56 = arith.constant 0 : index
    %c0_57 = arith.constant 0 : index
    %135 = vector.load %arg12[%c0_56, %c0_57] : memref<32x32xf32, #tpu.memory_space<vmem>>, vector<32x32xf32>
    %c0_58 = arith.constant 0 : index
    %c0_59 = arith.constant 0 : index
    %136 = vector.load %arg13[%c0_58, %c0_59] : memref<1x32xf32, #tpu.memory_space<vmem>>, vector<1x32xf32>
    %cst_60 = arith.constant dense<0.000000e+00> : vector<8x32xf32>
    %137 = tpu.matmul %134, %135, %cst_60 {dimension_numbers = #tpu.dot_dimension_numbers<[1], [1], [0], [0], [0, 0, 1, 0], [], []>} : vector<8x32xf32>, vector<32x32xf32>, vector<8x32xf32> -> vector<8x32xf32>
    %138 = vector.broadcast %136 : vector<1x32xf32> to vector<8x32xf32>
    %139 = arith.addf %137, %138 : vector<8x32xf32>
    %cst_61 = arith.constant 0.000000e+00 : f32
    %140 = vector.broadcast %cst_61 : f32 to vector<8x32xf32>
    %141 = arith.maximumf %139, %140 : vector<8x32xf32>
    %142 = arith.addf %134, %141 : vector<8x32xf32>
    %c0_62 = arith.constant 0 : index
    %c0_63 = arith.constant 0 : index
    %143 = vector.load %arg14[%c0_62, %c0_63] : memref<1x32xf32, #tpu.memory_space<vmem>>, vector<1x32xf32>
    %c0_64 = arith.constant 0 : index
    %c0_65 = arith.constant 0 : index
    %144 = vector.load %arg15[%c0_64, %c0_65] : memref<1x32xf32, #tpu.memory_space<vmem>>, vector<1x32xf32>
    %cst_66 = arith.constant dense<0.000000e+00> : vector<8xf32>
    %145 = vector.multi_reduction <add>, %142, %cst_66 [1] : vector<8x32xf32> to vector<8xf32>
    %146 = vector.shape_cast %145 : vector<8xf32> to vector<8x1xf32>
    %cst_67 = arith.constant 3.200000e+01 : f32
    %147 = vector.broadcast %cst_67 : f32 to vector<8x1xf32>
    %148 = arith.divf %146, %147 : vector<8x1xf32>
    %149 = vector.broadcast %148 : vector<8x1xf32> to vector<8x32xf32>
    %150 = arith.subf %142, %149 : vector<8x32xf32>
    %151 = arith.mulf %150, %150 : vector<8x32xf32>
    %cst_68 = arith.constant dense<0.000000e+00> : vector<8xf32>
    %152 = vector.multi_reduction <add>, %151, %cst_68 [1] : vector<8x32xf32> to vector<8xf32>
    %153 = vector.shape_cast %152 : vector<8xf32> to vector<8x1xf32>
    %cst_69 = arith.constant 3.200000e+01 : f32
    %154 = vector.broadcast %cst_69 : f32 to vector<8x1xf32>
    %155 = arith.divf %153, %154 : vector<8x1xf32>
    %cst_70 = arith.constant 9.99999974E-6 : f32
    %156 = vector.broadcast %cst_70 : f32 to vector<8x1xf32>
    %157 = arith.addf %155, %156 : vector<8x1xf32>
    %158 = math.rsqrt %157 : vector<8x1xf32>
    %159 = vector.broadcast %158 : vector<8x1xf32> to vector<8x32xf32>
    %160 = arith.mulf %150, %159 : vector<8x32xf32>
    %161 = vector.broadcast %143 : vector<1x32xf32> to vector<8x32xf32>
    %162 = arith.mulf %160, %161 : vector<8x32xf32>
    %163 = vector.broadcast %144 : vector<1x32xf32> to vector<8x32xf32>
    %164 = arith.addf %162, %163 : vector<8x32xf32>
    %165 = tpu.concatenate %164, %106 in 1 : vector<8x32xf32>, vector<8x16xf32> -> vector<8x48xf32>
    %c0_71 = arith.constant 0 : index
    %c0_72 = arith.constant 0 : index
    %c0_73 = arith.constant 0 : index
    %166 = vector.load %arg16[%c0_71, %c0_72, %c0_73] : memref<1x8x48xf32, #tpu.memory_space<vmem>>, vector<1x8x48xf32>
    %167 = vector.shape_cast %166 : vector<1x8x48xf32> to vector<8x48xf32>
    %168 = vector.shape_cast %165 : vector<8x48xf32> to vector<1x8x48xf32>
    tpu.vector_store %arg16[%c0_71, %c0_72, %c0_73], %168 {strides = array<i32>} : memref<1x8x48xf32, #tpu.memory_space<vmem>>, vector<1x8x48xf32>,
    return
  }
  func.func @transform_0(%arg0: i32) -> (i32, i32, i32) {
    %c0_i32 = arith.constant 0 : i32
    %c0_i32_0 = arith.constant 0 : i32
    %c0_i32_1 = arith.constant 0 : i32
    return %arg0, %c0_i32, %c0_i32_0 : i32, i32, i32
  }
  func.func @transform_1(%arg0: i32) -> (i32, i32, i32) {
    %c0_i32 = arith.constant 0 : i32
    %c0_i32_0 = arith.constant 0 : i32
    %c0_i32_1 = arith.constant 0 : i32
    return %arg0, %c0_i32, %c0_i32_0 : i32, i32, i32
  }
  func.func @transform_2(%arg0: i32) -> (i32, i32, i32) {
    %c0_i32 = arith.constant 0 : i32
    %c0_i32_0 = arith.constant 0 : i32
    %c0_i32_1 = arith.constant 0 : i32
    return %arg0, %c0_i32, %c0_i32_0 : i32, i32, i32
  }
  func.func @transform_3(%arg0: i32) -> (i32, i32) {
    %c0_i32 = arith.constant 0 : i32
    %c0_i32_0 = arith.constant 0 : i32
    %c0_i32_1 = arith.constant 0 : i32
    return %c0_i32, %c0_i32_0 : i32, i32
  }
  func.func @transform_4(%arg0: i32) -> (i32, i32) {
    %c0_i32 = arith.constant 0 : i32
    %c0_i32_0 = arith.constant 0 : i32
    %c0_i32_1 = arith.constant 0 : i32
    return %c0_i32, %c0_i32_0 : i32, i32
  }
  func.func @transform_5(%arg0: i32) -> (i32, i32) {
    %c0_i32 = arith.constant 0 : i32
    %c0_i32_0 = arith.constant 0 : i32
    %c0_i32_1 = arith.constant 0 : i32
    return %c0_i32, %c0_i32_0 : i32, i32
  }
  func.func @transform_6(%arg0: i32) -> (i32, i32) {
    %c0_i32 = arith.constant 0 : i32
    %c0_i32_0 = arith.constant 0 : i32
    %c0_i32_1 = arith.constant 0 : i32
    return %c0_i32, %c0_i32_0 : i32, i32
  }
  func.func @transform_7(%arg0: i32) -> (i32, i32) {
    %c0_i32 = arith.constant 0 : i32
    %c0_i32_0 = arith.constant 0 : i32
    %c0_i32_1 = arith.constant 0 : i32
    return %c0_i32, %c0_i32_0 : i32, i32
  }
  func.func @transform_8(%arg0: i32) -> (i32, i32) {
    %c0_i32 = arith.constant 0 : i32
    %c0_i32_0 = arith.constant 0 : i32
    %c0_i32_1 = arith.constant 0 : i32
    return %c0_i32, %c0_i32_0 : i32, i32
  }
  func.func @transform_9(%arg0: i32) -> (i32, i32) {
    %c0_i32 = arith.constant 0 : i32
    %c0_i32_0 = arith.constant 0 : i32
    %c0_i32_1 = arith.constant 0 : i32
    return %c0_i32, %c0_i32_0 : i32, i32
  }
  func.func @transform_10(%arg0: i32) -> (i32, i32) {
    %c0_i32 = arith.constant 0 : i32
    %c0_i32_0 = arith.constant 0 : i32
    %c0_i32_1 = arith.constant 0 : i32
    return %c0_i32, %c0_i32_0 : i32, i32
  }
  func.func @transform_11(%arg0: i32) -> (i32, i32) {
    %c0_i32 = arith.constant 0 : i32
    %c0_i32_0 = arith.constant 0 : i32
    %c0_i32_1 = arith.constant 0 : i32
    return %c0_i32, %c0_i32_0 : i32, i32
  }
  func.func @transform_12(%arg0: i32) -> (i32, i32) {
    %c0_i32 = arith.constant 0 : i32
    %c0_i32_0 = arith.constant 0 : i32
    %c0_i32_1 = arith.constant 0 : i32
    return %c0_i32, %c0_i32_0 : i32, i32
  }
  func.func @transform_13(%arg0: i32) -> (i32, i32) {
    %c0_i32 = arith.constant 0 : i32
    %c0_i32_0 = arith.constant 0 : i32
    %c0_i32_1 = arith.constant 0 : i32
    return %c0_i32, %c0_i32_0 : i32, i32
  }
  func.func @transform_14(%arg0: i32) -> (i32, i32) {
    %c0_i32 = arith.constant 0 : i32
    %c0_i32_0 = arith.constant 0 : i32
    %c0_i32_1 = arith.constant 0 : i32
    return %c0_i32, %c0_i32_0 : i32, i32
  }
  func.func @transform_15(%arg0: i32) -> (i32, i32, i32) {
    %c0_i32 = arith.constant 0 : i32
    %c0_i32_0 = arith.constant 0 : i32
    %c0_i32_1 = arith.constant 0 : i32
    return %arg0, %c0_i32, %c0_i32_0 : i32, i32, i32
  }
}

</mosaic_0001>

<bundles_post_ra>
// kernel: tpu_custom_call.1
= control target key start
LH: loop header
LB: loop body
LE: loop exit
PB: predicated region body
PF: predicated region fallthrough
CT: control target
= control target key end

     0   :  { %s3250_s0 = inlined_call_operand.hbm [shape: f32[2,8,32], index: 0, kind: input, shape index: {}]   ;;  %s3251_s1 = inlined_call_operand.vmem [shape: f32[2,16,32], index: 1, kind: input, shape index: {}]   ;;  %s3252_s2 = inlined_call_operand.vmem [shape: f32[2,1,16], index: 2, kind: input, shape index: {}]   ;;  %s3253_s3 = inlined_call_operand.vmem [shape: f32[32,32], index: 3, kind: input, shape index: {}]   ;;  %s3254_s4 = inlined_call_operand.hbm [shape: f32[1,32], index: 4, kind: input, shape index: {}]   ;;  %s3255_s5 = inlined_call_operand.vmem [shape: f32[64,32], index: 5, kind: input, shape index: {}]   ;;  %s3256_s6 = inlined_call_operand.hbm [shape: f32[1,64], index: 6, kind: input, shape index: {}]   ;;  %s3257_s7 = inlined_call_operand.vmem [shape: f32[32,32], index: 7, kind: input, shape index: {}]   ;;  %s3258_s8 = inlined_call_operand.hbm [shape: f32[1,32], index: 8, kind: input, shape index: {}]   ;;  %s3259_s9 = inlined_call_operand.hbm [shape: f32[1,32], index: 9, kind: input, shape index: {}]   ;;  %s3260_s10 = inlined_call_operand.vmem [shape: f32[1,32], index: 10, kind: input, shape index: {}]   ;;  %s3261_s11 = inlined_call_operand.vmem [shape: f32[32,32], index: 11, kind: input, shape index: {}]   ;;  %s3262_s12 = inlined_call_operand.vmem [shape: f32[1,32], index: 12, kind: input, shape index: {}]   ;;  %s3263_s13 = inlined_call_operand.vmem [shape: f32[1,32], index: 13, kind: input, shape index: {}]   ;;  %s3264_s14 = inlined_call_operand.vmem [shape: f32[1,32], index: 14, kind: input, shape index: {}]   ;;  %s3265_s15 = inlined_call_operand.hbm [shape: f32[2,8,48], index: 15, kind: output, shape index: {}]  }
   0x1   :  { %3272 = sst [smem:[#allocation16_spill]] %s3250_s0 }
   0x2   :  { %3273 = sst [smem:[#allocation17_spill]] %s3251_s1 }
   0x3   :  { %3274 = sst [smem:[#allocation18_spill]] %s3254_s4 }
   0x4   :  { %3275 = sst [smem:[#allocation19_spill]] %s3256_s6 }
   0x5   :  { %3276 = sst [smem:[#allocation20_spill]] %s3260_s10 }
   0x6   :  { %3277 = sst [smem:[#allocation21_spill]] %s3261_s11 }
   0x7   :  { %3278 = sst [smem:[#allocation22_spill]] %s3262_s12 }
   0x8   :  { %3279 = sst [smem:[#allocation23_spill]] %s3263_s13 }
   0x9   :  { %3280 = sst [smem:[#allocation24_spill]] %s3264_s14 }
   0xa   :  { %3281 = sst [smem:[#allocation25_spill]] %s3265_s15 }
   0xb   :  { %20 = vsyncpa [#allocation3], 0 }
   0xc   :  { %22 = vsyncpa [#allocation3 + $0x1], 0 }
   0xd   :  { %23 = vsyncpa [#allocation6], 0 }
   0xe   :  { %24 = vsyncpa [#allocation9], 0 }
   0xf   :  { %25 = vsyncpa [#allocation4], 0 }
  0x10   :  { %27 = vsyncpa [#allocation4 + $0x1], 0  ;;  %s2722_s18 = smov 0   ;;  %s2724_s19 = smov 0  }
  0x11   :  { %s2726_s20 = smov 0   ;;  %s2728_s21 = smov 0  }
  0x12 LB: > { %s2622_s22 = smov [#allocation5]   ;;  %s2743_s24 = sadd.s32 4294967295, %s2620_s21   ;;  %s2620_s21 = sphi %s2728_s21, %s3317_s21   ;;  %s2616_s20 = sphi %s2726_s20, %s3316_s20   ;;  %s2612_s19 = sphi %s2724_s19, %s3315_s19   ;;  %s2608_s18 = sphi %s2722_s18, %s3314_s18  }
  0x13   : > { %s410_s23 = sshll.u32 %s2622_s22, 4  ;;  %p1944_p0 = scmp.ge.s32.totalorder %s2620_s21, 1  ;;  %s2748_s23 = int_to_ptr.vmem [resolvable:$true] %s410_s23 }
  0x14   : > { %p3268_p1 = scmp.eq.s32.totalorder %s2743_s24, 0  ;;  %p394_p2 = scmp.lt.s32.totalorder %s2620_s21, 3 }
  0x15   : > { %s2623_s26 = smov [#allocation8]   ;;  %s2624_s28 = smov [#allocation7]  }
  0x16   : > { %p2750_p3 = pnand %p1944_p0, %p394_p2  ;;  %s438_s27 = sshll.u32 %s2623_s26, 4  ;;  %s2757_s27 = int_to_ptr.vmem [resolvable:$true] %s438_s27 }
  0x17   : > { %s424_s29 = sshll.u32 %s2624_s28, 4  ;;  %s2625_s16 = smov [#allocation10]   ;;  %s2765_s29 = int_to_ptr.vmem [resolvable:$true] %s424_s29 }
  0x18   : > { %s3282_s25 = scalar_select %p2750_p3, 1, 0 }
  0x19   : > { %p2268_p5 = pneg %p2750_p3  ;;  %s2767_s17 = sshll.u32 %s2625_s16, 4  ;;  %s450_s17 = int_to_ptr.vmem [resolvable:$true] %s2767_s17 }
  0x1a   : > { %s3284_s4 = sld [smem:[#allocation18_spill]] }
  0x1b   : > { %p2761_p6 = pnand %p2268_p5, %p3268_p1 }
  0x1d   : > { %p2777_p8 = pneg %p2761_p6 }
  0x20   : > { %s2404_s14 = scalar_lea.hbm %s3284_s4, 16 }
  0x21   : > { %p2405_p7 = scmp.ne.s32.totalorder %s3284_s4, %s2404_s14  ;;  %p2411_p11 = scmp.lt.u32.totalorder %s2404_s14, %s3284_s4 }
  0x23   : > { %p2407_p9 = pnand %p2777_p8, %p2405_p7 }
  0x25   : > { %p2408_p10 = pneg %p2407_p9 }
  0x27   : > { %p2413_p12 = pnand %p2411_p11, %p2408_p10 }
  0x29   : > { %2416 = shalt.err (!%p2413_p12)
}
  0x2a   : > { %s2417_s13 = scalar_lea.vmem %s2748_s23, 16  ;;  %s2424_s15 = scalar_lea.vmem %s2748_s23, 32 }
  0x2b   : > { %p2418_p13 = scmp.ne.s32.totalorder %s2748_s23, %s2417_s13  ;;  %p2425_p5 = scmp.lt.s32.totalorder %s2748_s23, %s2748_s23 }
  0x2c   : > { %p2426_p7 = scmp.lt.s32.totalorder %s2424_s15, %s2417_s13 }
  0x2d   : > { %p2420_p0 = pnand %p2418_p13, %p2777_p8 }
  0x2e   : > { %p2427_p9 = por %p2426_p7, %p2425_p5 }
  0x2f   : > { %p2421_p2 = pneg %p2420_p0 }
  0x31   : > { %p2428_p4 = pnand %p2427_p9, %p2421_p2 }
  0x33   : > { %2431 = shalt.err (!%p2428_p4)
}
  0x34   : > { %2271 = dma.hbm_to_vmem [thread:$0]  (!%p2761_p6), %s3284_s4, 16, %s2748_s23, [#allocation6]  }
  0x35   : > { %s2432_s16 = scalar_lea.hbm %s3258_s8, 16 }
  0x36   : > { %p2433_p10 = scmp.ne.s32.totalorder %s3258_s8, %s2432_s16  ;;  %p2439_p4 = scmp.lt.u32.totalorder %s2432_s16, %s3258_s8 }
  0x38   : > { %p2435_p11 = pnand %p2433_p10, %p2777_p8 }
  0x3a   : > { %p2436_p12 = pneg %p2435_p11 }
  0x3c   : > { %p2441_p13 = pnand %p2439_p4, %p2436_p12 }
  0x3e   : > { %2444 = shalt.err (!%p2441_p13)
}
  0x3f   : > { %s2445_s23 = scalar_lea.vmem %s2757_s27, 16  ;;  %s2452_s10 = scalar_lea.vmem %s2757_s27, 32 }
  0x40   : > { %p2446_p0 = scmp.ne.s32.totalorder %s2757_s27, %s2445_s23  ;;  %p2453_p7 = scmp.lt.s32.totalorder %s2757_s27, %s2757_s27 }
  0x41   : > { %p2454_p9 = scmp.lt.s32.totalorder %s2452_s10, %s2445_s23 }
  0x42   : > { %p2448_p2 = pnand %p2446_p0, %p2777_p8 }
  0x43   : > { %p2455_p10 = por %p2454_p9, %p2453_p7 }
  0x44   : > { %p2449_p5 = pneg %p2448_p2 }
  0x46   : > { %p2456_p11 = pnand %p2455_p10, %p2449_p5 }
  0x48   : > { %2459 = shalt.err (!%p2456_p11)
}
  0x49   : > { %2277 = dma.hbm_to_vmem [thread:$0]  (!%p2761_p6), %s3258_s8, 16, %s2757_s27, [#allocation9]  }
  0x4a   : > { %s3286_s6 = sld [smem:[#allocation19_spill]] }
  0x50   : > { %s2460_s26 = scalar_lea.hbm %s3286_s6, 16 }
  0x51   : > { %p2461_p12 = scmp.ne.s32.totalorder %s3286_s6, %s2460_s26  ;;  %p2467_p0 = scmp.lt.u32.totalorder %s2460_s26, %s3286_s6 }
  0x53   : > { %p2463_p4 = pnand %p2461_p12, %p2777_p8 }
  0x55   : > { %p2464_p13 = pneg %p2463_p4 }
  0x57   : > { %p2469_p2 = pnand %p2467_p0, %p2464_p13 }
  0x59   : > { %2472 = shalt.err (!%p2469_p2)
}
  0x5a   : > { %s2473_s27 = scalar_lea.vmem %s2765_s29, 16  ;;  %s2480_s10 = scalar_lea.vmem %s2765_s29, 32 }
  0x5b   : > { %p2474_p5 = scmp.ne.s32.totalorder %s2765_s29, %s2473_s27  ;;  %p2481_p10 = scmp.lt.s32.totalorder %s2765_s29, %s2765_s29 }
  0x5c   : > { %p2482_p11 = scmp.lt.s32.totalorder %s2480_s10, %s2473_s27 }
  0x5d   : > { %p2476_p7 = pnand %p2474_p5, %p2777_p8 }
  0x5e   : > { %p2483_p12 = por %p2482_p11, %p2481_p10 }
  0x5f   : > { %p2477_p9 = pneg %p2476_p7 }
  0x61   : > { %p2484_p4 = pnand %p2483_p12, %p2477_p9 }
  0x63   : > { %2487 = shalt.err (!%p2484_p4)
}
  0x64   : > { %2274 = dma.hbm_to_vmem [thread:$0]  (!%p2761_p6), %s3286_s6, 16, %s2765_s29, [#allocation6]  }
  0x65   : > { %s2488_s26 = scalar_lea.hbm %s3259_s9, 16 }
  0x66   : > { %p2489_p13 = scmp.ne.s32.totalorder %s3259_s9, %s2488_s26  ;;  %p2495_p5 = scmp.lt.u32.totalorder %s2488_s26, %s3259_s9 }
  0x68   : > { %p2491_p0 = pnand %p2489_p13, %p2777_p8 }
  0x6a   : > { %p2492_p2 = pneg %p2491_p0 }
  0x6c   : > { %p2497_p7 = pnand %p2495_p5, %p2492_p2 }
  0x6e   : > { %2500 = shalt.err (!%p2497_p7)
}
  0x6f   : > { %s2501_s27 = scalar_lea.vmem %s450_s17, 16  ;;  %s2508_s29 = scalar_lea.vmem %s450_s17, 32 }
  0x70   : > { %p2502_p9 = scmp.ne.s32.totalorder %s450_s17, %s2501_s27  ;;  %p2509_p12 = scmp.lt.s32.totalorder %s450_s17, %s450_s17 }
  0x71   : > { %p2510_p4 = scmp.lt.s32.totalorder %s2508_s29, %s2501_s27 }
  0x72   : > { %p2504_p10 = pnand %p2502_p9, %p2777_p8 }
  0x73   : > { %p2511_p1 = por %p2510_p4, %p2509_p12 }
  0x74   : > { %p2505_p11 = pneg %p2504_p10 }
  0x76   : > { %p2512_p3 = pnand %p2511_p1, %p2505_p11 }
  0x78   : > { %2515 = shalt.err (!%p2512_p3)
}
  0x79   : > { %2280 = dma.hbm_to_vmem [thread:$0]  (!%p2761_p6), %s3259_s9, 16, %s450_s17, [#allocation9]  }
  0x7a   : > { %s1943_s28 = sadd.s32 4294967294, %s2620_s21   ;;  %s2868_s30 = sadd.s32 1, %s2620_s21  }
  0x7b   : > { %s37_s12 = ssub.s32 %s2620_s21, %s2868_s30  ;;  %s40_s14 = sadd.s32 1, %s2616_s20 }
  0x7c   : > { %p38_p1 = scmp.eq.s32.totalorder %s37_s12, 0  ;;  %p47_p3 = scmp.ne.s32.totalorder %s2616_s20, %s2612_s19 }
  0x7d   : > { %p48_p8 = scmp.eq.s32.totalorder %s2620_s21, 0  ;;  %p53_p13 = scmp.ne.s32.totalorder %s2612_s19, %s2608_s18 }
  0x7e   : > { %s2879_s22 = scalar_select %p38_p1, %s2616_s20, %s40_s14  }
  0x7f   : > { %p2881_p0 = por %p48_p8, %p47_p3  ;;  %p3288_p2 = scmp.eq.s32.totalorder %s2743_s24, 0 }
  0x80   : > { %p381_p5 = scmp.eq.s32.totalorder %s2743_s24, 1  ;;  %p387_p7 = scmp.eq.s32.totalorder %s1943_s28, 1 }
  0x81   : > { %p2887_p6 = por %p3288_p2, %p53_p13  ;;  %p2293_p9 = scmp.lt.s32.totalorder %s2620_s21, 2 }
  0x82   : > { %s475_s16 = sand.u32 1, %s2616_s20   ;;  %p2894_p10 = por %p381_p5, %p47_p3 }
  0x83   : > { %p2898_p11 = por %p387_p7, %p53_p13  ;;  %s1950_s23 = sshll.u32 %s475_s16, 3 }
  0x84   : > { %s3290_s13 = scalar_select %p2894_p10, 1, 0 }
  0x85   : > { %s3291_s15 = scalar_select %p2898_p11, 1, 0 }
  0x86   : > { %s1951_s27 = sshll.u32 %s2620_s21, 7  ;;  %s3292_s0 = sld [smem:[#allocation16_spill]] }
  0x87   : > { %s479_s28 = scalar_lea.vmem [#allocation2], %s1950_s23  ;;  %p2912_p12 = pnand %p2293_p9, %p2881_p0 }
  0x88   : > { %s486_s12 = sshll.u32 %s479_s28, 4  ;;  %s476_s4 = scalar_lea.sflag [#allocation3], %s475_s16  ;;  %s2908_s12 = int_to_ptr.vmem [resolvable:$true] %s486_s12 }
  0x89   : > { %p2518_p1 = pneg %p2912_p12 }
  0x8c   : > { %s2906_s11 = scalar_lea.hbm %s3292_s0, %s1951_s27  ;;  %s2521_s29 = scalar_lea.hbm %s3292_s0, 256 }
  0x8d   : > { %s2516_s6 = scalar_lea.hbm %s2906_s11, 128  ;;  %p2522_p13 = scmp.lt.u32.totalorder %s2906_s11, %s3292_s0 }
  0x8e   : > { %p2517_p4 = scmp.ne.s32.totalorder %s2906_s11, %s2516_s6  ;;  %p2523_p0 = scmp.lt.u32.totalorder %s2521_s29, %s2516_s6 }
  0x8f   : > { %p2525_p5 = scmp.lt.u32.totalorder %s2516_s6, %s2906_s11 }
  0x90   : > { %p2519_p3 = pnand %p2518_p1, %p2517_p4  ;;  %p2524_p2 = por %p2523_p0, %p2522_p13 }
  0x92   : > { %p2520_p8 = pneg %p2519_p3  ;;  %p2526_p7 = por %p2525_p5, %p2524_p2 }
  0x94   : > { %p2527_p9 = pnand %p2526_p7, %p2520_p8 }
  0x96   : > { %2530 = shalt.err (!%p2527_p9)
}
  0x97   : > { %s2531_s16 = scalar_lea.vmem %s2908_s12, 128  ;;  %s2626_s28 = smov [#allocation2]  }
  0x98   : > { %p2532_p4 = scmp.ne.s32.totalorder %s2908_s12, %s2531_s16  ;;  %s2536_s23 = sshll.u32 %s2626_s28, 4  ;;  %s2537_s23 = int_to_ptr.vmem [resolvable:$false] %s2536_s23 }
  0x99   : > { %s2538_s27 = scalar_lea.vmem %s2537_s23, 256  ;;  %p2539_p10 = scmp.lt.s32.totalorder %s2908_s12, %s2537_s23 }
  0x9a   : > { %p2534_p3 = pnand %p2532_p4, %p2518_p1  ;;  %p2540_p13 = scmp.lt.s32.totalorder %s2538_s27, %s2531_s16 }
  0x9c   : > { %p2535_p11 = pneg %p2534_p3  ;;  %p2541_p0 = por %p2540_p13, %p2539_p10 }
  0x9e   : > { %p2542_p2 = pnand %p2541_p0, %p2535_p11 }
  0xa0   : > { %2545 = shalt.err (!%p2542_p2)
}
  0xa1   : > { %2284 = dma.hbm_to_vmem [thread:$0]  (!%p2912_p12), %s2906_s11, 128, %s2908_s12, %s476_s4  }
  0xa2   : > { %p3294_p8 = scmp.ne.s32.totalorder %s3282_s25, 0 }
  0xa3   : > { %s2944_s6 = sand.u32 (!%p3294_p8), 1, %s2612_s19  }
  0xa4   : > { %509 = sbr.rel (%p3294_p8) target bundleno = 3500 (0xdac), region = 80  ;;  %s3271_s29 = sshll.u32 (!%p3294_p8), %s2944_s6, 3 }
  0xa5   : > { %s512_s26 = scalar_lea.sflag (!%p3294_p8), [#allocation3], %s2944_s6  ;;  %s2950_s10 = scalar_lea.vmem (!%p3294_p8), [#allocation2], %s3271_s29 }
  0xab   : > { %2591 = dma.done.wait (%p2887_p6), %s512_s26, 128  }
  0xac   : > { %2593 = vsyncadd (%p2887_p6), %s512_s26, 4294967168  ;;  %p3295_p10 = scmp.eq.s32.totalorder %s2743_s24, 0 }
  0xae   : > { %2595 = dma.done.wait (%p3295_p10), [#allocation6], 32   ;;  %p3296_p11 = pmov %p3295_p10 }
  0xaf   : > { %p3297_p12 = pmov %p3295_p10 }
  0xb0   : > { %2597 = vsyncadd (%p3296_p11), [#allocation6], 4294967264 }
  0xb1   : > { %2599 = dma.done.wait (%p3297_p12), [#allocation9], 32   ;;  %p3298_p1 = pmov %p3295_p10 }
  0xb2   : > { %p586_p5 = scmp.lt.s32.totalorder %s2743_s24, 1  ;;  %v2627_v0 = vmov 0.0|0.0   ;;  %vm2628_vm0 = vmmov 0   ;;  %v2629_v1 = vmov 0.0   ;;  %vm609_vm1 = vcmask 261120   ;;  %v695_v3 = vld [vmem:[%s3255_s5] sm:$0xff] }
  0xb3   : > { %2601 = vsyncadd (%p3298_p1), [#allocation9], 4294967264  ;;  %2172 = vmatprep.subr.bf16.mxu0 %v2627_v0  ;;  %2072 = vmatprep.mubr.msk.f32.mxu0 %vm2628_vm0, %v2629_v1  ;;  %v696_v4 = vld [vmem:[%s3255_s5 + $0x8] sm:$0xff]  ;;  %v697_v5 = vld [vmem:[%s3255_s5 + $0x10] sm:$0xff]  ;;  %s3301_s1 = sld [smem:[#allocation17_spill]]  ;;  %vm817_vm3 = vcmask 64512   ;;  %v899_v40 = vlaneseq }
  0xb4   : > { %s2967_s4 = scalar_select %p586_p5, %s2743_s24, 1  ;;  %vm2974_vm2 = vmpackc.low %vm609_vm1, %vm609_vm1  ;;  %v2180_v6 = vpack.c.bf16 %v696_v4, %v695_v3  ;;  %v698_v7 = vld [vmem:[%s3255_s5 + $0x18] sm:$0xff]  ;;  %v598_v9 = vld [vmem:[%s3253_s3] sm:$0xff]  ;;  %vm905_vm6 = vcmask 130048   ;;  %vm1536_vm7 = vcmask 195584   ;;  %vm1798_vm8 = vcmask 392192  }
  0xb5   : > { %v2186_v8 = vpack.c.bf16 %v698_v7, %v697_v5  ;;  %v599_v10 = vld [vmem:[%s3253_s3 + $0x8] sm:$0xff]  ;;  %v699_v13 = vld [vmem:[%s3255_s5 + $0x20] sm:$0xff]  ;;  %v600_v15 = vld [vmem:[%s3253_s3 + $0x10] sm:$0xff]  ;;  %s2632_s29 = smov 112   ;;  %v900_v42 = vshrl.u32 %v899_v40, 7  ;;  %s2634_s23 = smov 80  }
  0xb6   : > { %s2014_s25 = sshll.u32 %s2967_s4, 4  ;;  %2182 = vmatprep.subr.msk.bf16.mxu1 %vm2974_vm2, %v2180_v6  ;;  %v2173_v12 = vpack.c.bf16 %v599_v10, %v598_v9  ;;  %v700_v14 = vld [vmem:[%s3255_s5 + $0x28] sm:$0xff]  ;;  %v601_v16 = vld [vmem:[%s3253_s3 + $0x18] sm:$0xff]  ;;  %v701_v19 = vld [vmem:[%s3255_s5 + $0x30] sm:$0xff]  ;;  %s593_s28 = scalar_lea.vmem %s3252_s2, %s2967_s4 }
  0xb7   : > { %2185 = vmatpush3.bf16.xpose.msk.msra.mxu1 %vm2974_vm2, %v2180_v6  ;;  %v2192_v17 = vpack.c.bf16 %v700_v14, %v699_v13  ;;  %v2177_v18 = vpack.c.bf16 %v601_v16, %v600_v15  ;;  %v702_v20 = vld [vmem:[%s3255_s5 + $0x38] sm:$0xff]  ;;  %v3038_v22 = vld [vmem:[%s2950_s10] sm:$0xff]  ;;  %v1967_v26 = vld [vmem:[#allocation7] ss:$0 sm:$0xff]  ;;  %s2630_s10 = smov 96   ;;  %v901_v43 = vsub.s32 0, %v900_v42 }
  0xb8   : > { %2188 = vmatprep.subr.msk.bf16.mxu1 %vm2974_vm2, %v2186_v8  ;;  %2175 = vmatpush3.bf16.xpose.msk.msra.mxu0 %vm2974_vm2, %v2173_v12  ;;  %v2198_v21 = vpack.c.bf16 %v702_v20, %v701_v19  ;;  %vm3057_vm4 = vmpackc.low %vm817_vm3, %vm817_vm3  ;;  %v1961_v34 = vld [vmem:[#allocation5] ss:$0 sm:$0xff]  ;;  %v597_v41 = vld [vmem:[%s593_s28] sm:$0x1]  ;;  %s2633_s4 = smov 88   ;;  %s2635_s27 = smov 104  }
  0xb9   : > { %s2990_s26 = scalar_lea.vmem %s3301_s1, %s2014_s25  ;;  %2176 = vmatprep.subr.bf16.mxu0 %v2627_v0  ;;  %vm815_vm5 = vcmp.eq.f32.partialorder %v597_v41, 0.0  ;;  %s2636_s17 = smov 72  }
  0xba   : > { %v595_v11 = vld [vmem:[%s2990_s26] sm:$0xff]  ;;  %v596_v23 = vld [vmem:[%s2990_s26 + $0x8] sm:$0xff]  ;;  %s2631_s26 = smov 120   ;;  %v816_v44 = vsel %vm815_vm5, -1e+09, %v2629_v1  ;;  %s2637_s11 = smov 16  }
  0xbb   : > { %2091 = vmatprep.mubr.msk.f32.mxu1 %vm609_vm1, %v595_v11  ;;  %v3083_v45 = vrot.slane %v816_v44, %v901_v43  ;;  %s2638_s12 = smov 8   ;;  %s3305_s28 = sld [smem:[#allocation20_spill]] }
  0xbc   : > { %s3307_s14 = sld [smem:[#allocation23_spill]]  ;;  %s3309_s25 = sshll.u32 %s2944_s6, 3 }
  0xbd   : > { %s585_s16 = scalar_lea.vmem [#allocation11], %s3309_s25  ;;  %p3311_p7 = scmp.ne.s32.totalorder %s3290_s13, 0 }
  0xbf   : > { %2191 = vmatpush3.bf16.xpose.msk.msra.mxu1 %vm2974_vm2, %v2186_v8 }
  0xc0   : > { %2194 = vmatprep.subr.msk.bf16.mxu1 %vm2974_vm2, %v2192_v17  ;;  %2179 = vmatpush3.bf16.xpose.msk.msra.mxu0 %vm2974_vm2, %v2177_v18 }
  0xc1   : > { %2204 = vmatprep.subr.bf16.mxu0 %v2627_v0 }
  0xc7   : > { %2197 = vmatpush3.bf16.xpose.msk.msra.mxu1 %vm2974_vm2, %v2192_v17  ;;  %2073 = vmatmul.mubr.msk.f32.vlgmr.msra.gmra.mrb[0].mxu0 %vm609_vm1, %v3038_v22 }
  0xc8   : > { %2200 = vmatprep.subr.msk.bf16.mxu1 %vm2974_vm2, %v2198_v21  ;;  %2098 = vmatprep.mubr.msk.f32.mxu0 %vm2628_vm0, %v2629_v1 }
  0xcf   : > { %2203 = vmatpush3.bf16.xpose.msk.msra.mxu1 %vm2974_vm2, %v2198_v21 }
  0xd0   : > { %2215 = vmatprep.subr.bf16.mxu1 %v2627_v0 }
  0xd6   : > { %2092 = vmatmul.mubr.msk.f32.vlgmr.msra.gmra.mrb[0].mxu1 %vm609_vm1, %v596_v23 }
  0xd7   : > { %2119 = vmatprep.mubr.msk.f32.mxu1 %vm2628_vm0, %v2629_v1 }
 0x19a   : > { %v691_v24 = vpop.f32.mrb[0].mxu0 }
 0x19b   : > { %v2074_v25 = vpop.f32.mrb[1].mxu0  ;;  %v3067_v35 = vadd.f32 %v1961_v34, %v691_v24 }
 0x1a9   : > { %v2093_v27 = vpop.f32.mrb[0].mxu1 }
 0x1aa   : > { %v812_v28 = vadd.f32 %v2093_v27, %v1967_v26  ;;  %v806_v29 = vpop.f32.mrb[1].mxu1 }
 0x1ab   : > { %v807_v30 = vadd.f32 %v1967_v26, %v806_v29 }
 0x1ad   : > { %v3061_v32 = vpack.i.bf16 %v812_v28, %v807_v30  ;;  %v2205_v33 = vpack.c.bf16 %v812_v28, %v807_v30 }
 0x1af   : > { %2350 = vrot.lane.b32.xlu1 %v3061_v32, %s2630_s10  ;;  %2207 = vmatpush3.bf16.xpose.msk.msra.mxu0 %vm3057_vm4, %v2205_v33 }
 0x1b0   : > { %2208 = vmatprep.subr.bf16.mxu0 %v2627_v0 }
 0x1b3   : > { %2355 = vrot.lane.b32.xlu1 %v3061_v32, %s2631_s26 }
 0x1b6   : > { %2099 = vmatmul.mubr.msk.f32.vlgmr.msra.gmra.mrb[2].mxu0 %vm817_vm3, %v3067_v35 }
 0x1b7   : > { %2360 = vrot.lane.b32.xlu1 %v3061_v32, %s2632_s29  ;;  %2105 = vmatprep.mubr.msk.f32.mxu0 %vm2628_vm0, %v2629_v1 }
 0x1bb   : > { %1172 = vrot.lane.b32.xlu1 %v3067_v35, %s2632_s29  ;;  %s2011_s29 = sshll.u32 %s2743_s24, 7  ;;  %s1801_s24 = scalar_lea.sflag [#allocation4], %s2944_s6 }
 0x221   : > { %v2351_v36 = vpop.permute.xlu1 %2350 }
 0x222   : > { %v2353_v37 = vunpack.i.h.bf16 %v2351_v36  ;;  %v2352_v38 = vunpack.i.l.bf16 %v2351_v36 }
 0x224   : > { %v2209_v39 = vpack.c.bf16 %v2353_v37, %v2352_v38 }
 0x225   : > { %v2356_v57 = vpop.permute.xlu1 %2355 }
 0x226   : > { %2210 = vmatpush3.bf16.msra.mxu0 %v2209_v39  ;;  %v2358_v58 = vunpack.i.h.bf16 %v2356_v57  ;;  %v2357_v59 = vunpack.i.l.bf16 %v2356_v57 }
 0x227   : > { %2211 = vmatprep.subr.bf16.mxu0 %v2627_v0 }
 0x228   : > { %v2212_v62 = vpack.c.bf16 %v2358_v58, %v2357_v59 }
 0x229   : > { %v2361_v63 = vpop.permute.xlu1 %2360 }
 0x22a   : > { %v2363_v3 = vunpack.i.h.bf16 %v2361_v63  ;;  %v2362_v4 = vunpack.i.l.bf16 %v2361_v63 }
 0x22c   : > { %v2219_v5 = vpack.c.bf16 %v2363_v3, %v2362_v4 }
 0x22d   : > { %v1173_v7 = vpop.permute.xlu1 %1172 }
 0x289   : > { %v893_v46 = vpop.f32.mrb[2].mxu0 }
 0x28a   : > { %v897_v47 = vmul.f32 0.35355338, %v893_v46  ;;  %v2100_v48 = vpop.f32.mrb[3].mxu0 }
 0x28c   : > { %v904_v49 = vadd.f32 %v3083_v45, %v897_v47 }
 0x28e   : > { %v906_v50 = vsel %vm905_vm6, %v904_v49, -inf }
 0x28f   : > { %907 = vmax.xlane.f32.xlu0 %v906_v50 }
 0x31c   : > { %v908_v51 = vpop.xlane.xlu0 %907 }
 0x31d   : > { %v909_v52 = vsub.f32 %v904_v49, %v908_v51 }
 0x31f   : > { %v910_v53 = vmul.f32 1.442695, %v909_v52 }
 0x321   : > { %2384 = vpow2.f32 %v910_v53 }
 0x32b   : > { %v2385_v54 = vpop.eup %2384 }
 0x32c   : > { %v912_v55 = vsel %vm905_vm6, %v2385_v54, 0.0 }
 0x32d   : > { %913 = vadd.xlane.f32.xlu0 %v912_v55 }
 0x343   : > { %997 = vrot.lane.b32.xlu0 %v3067_v35, %s2631_s26  ;;  %s3308_s26 = sld [smem:[#allocation24_spill]] }
 0x3ba   : > { %v914_v56 = vpop.xlane.xlu0 %913 }
 0x3bb   : > { %2386 = vrcp.f32 %v914_v56 }
 0x3be   : > { %v998_v6 = vpop.permute.xlu0 %997 }
 0x3c5   : > { %v2387_v60 = vpop.eup %2386 }
 0x3c6   : > { %v3090_v61 = vmul.f32 %v2387_v60, %v2385_v54 }
 0x3c8   : > { %2106 = vmatmul.mubr.msk.f32.vlgmr.msra.gmra.mrb[4].mxu0 %vm905_vm6, %v3090_v61 }
 0x3c9   : > { %2214 = vmatpush3.bf16.xpose.msk.msra.mxu0 %vm3057_vm4, %v2212_v62  ;;  %2112 = vmatprep.mubr.msk.f32.mxu0 %vm2628_vm0, %v2629_v1 }
 0x3ca   : > { %2218 = vmatprep.subr.bf16.mxu0 %v2627_v0 }
 0x3d0   : > { %2113 = vmatmul.mubr.msk.f32.vlgmr.msra.gmra.mrb[6].mxu0 %vm817_vm3, %v998_v6 }
 0x3d1   : > { %2221 = vmatpush3.bf16.xpose.msk.msra.mxu0 %vm3057_vm4, %v2219_v5  ;;  %2126 = vmatprep.mubr.msk.f32.mxu0 %vm2628_vm0, %v2629_v1 }
 0x3d2   : > { %2229 = vmatprep.subr.bf16.mxu0 %v2627_v0 }
 0x3d8   : > { %2127 = vmatmul.mubr.msk.f32.vlgmr.msra.gmra.mrb[8].mxu0 %vm817_vm3, %v1173_v7 }
 0x3d9   : > { %2147 = vmatprep.mubr.msk.f32.mxu0 %vm2628_vm0, %v2629_v1 }
 0x49b   : > { %v3108_v8 = vpop.f32.mrb[4].mxu0 }
 0x49c   : > { %v2107_v9 = vpop.f32.mrb[5].mxu0 }
 0x4a3   : > { %v1075_v10 = vpop.f32.mrb[6].mxu0 }
 0x4a4   : > { %v1079_v11 = vmul.f32 0.35355338, %v1075_v10  ;;  %v2114_v12 = vpop.f32.mrb[7].mxu0 }
 0x4a6   : > { %v1080_v13 = vadd.f32 %v1079_v11, %v3083_v45 }
 0x4a8   : > { %v1081_v14 = vsel %vm905_vm6, %v1080_v13, -inf }
 0x4a9   : > { %1082 = vmax.xlane.f32.xlu1 %v1081_v14  ;;  %v1539_v14 = vld [vmem:[%s3257_s7] sm:$0xff] }
 0x4ab   : > { %v1250_v15 = vpop.f32.mrb[8].mxu0 }
 0x4ac   : > { %v1254_v16 = vmul.f32 0.35355338, %v1250_v15  ;;  %v2128_v17 = vpop.f32.mrb[9].mxu0  ;;  %v1540_v15 = vld [vmem:[%s3257_s7 + $0x8] sm:$0xff] }
 0x4ad   : > { %v1541_v17 = vld [vmem:[%s3257_s7 + $0x10] sm:$0xff] }
 0x4ae   : > { %v1255_v18 = vadd.f32 %v1254_v16, %v3083_v45  ;;  %v2233_v16 = vpack.c.bf16 %v1540_v15, %v1539_v14 }
 0x4b0   : > { %v1256_v19 = vsel %vm905_vm6, %v1255_v18, -inf }
 0x4b1   : > { %1257 = vmax.xlane.f32.xlu0 %v1256_v19 }
 0x4ba   : > { %2365 = vrot.lane.b32.xlu1 %v3061_v32, %s2633_s4  ;;  %s2639_s4 = smov 24  }
 0x4c7   : > { %2370 = vrot.lane.b32.xlu0 %v3061_v32, %s2634_s23  ;;  %s2640_s23 = smov 32  }
 0x536   : > { %v1083_v20 = vpop.xlane.xlu1 %1082 }
 0x537   : > { %v1084_v21 = vsub.f32 %v1080_v13, %v1083_v20 }
 0x539   : > { %v1085_v23 = vmul.f32 1.442695, %v1084_v21 }
 0x53a   : > { %v2366_v24 = vpop.permute.xlu1 %2365 }
 0x53b   : > { %2388 = vpow2.f32 %v1085_v23  ;;  %v2368_v25 = vunpack.i.h.bf16 %v2366_v24  ;;  %v2367_v26 = vunpack.i.l.bf16 %v2366_v24 }
 0x53d   : > { %v2216_v27 = vpack.c.bf16 %v2368_v25, %v2367_v26 }
 0x53e   : > { %v1258_v30 = vpop.xlane.xlu0 %1257 }
 0x53f   : > { %2217 = vmatpush3.bf16.msra.mxu1 %v2216_v27  ;;  %v1259_v33 = vsub.f32 %v1255_v18, %v1258_v30 }
 0x540   : > { %2222 = vmatprep.subr.bf16.mxu1 %v2627_v0 }
 0x541   : > { %v1260_v34 = vmul.f32 1.442695, %v1259_v33 }
 0x542   : > { %v2371_v39 = vpop.permute.xlu0 %2370 }
 0x543   : > { %2390 = vpow2.f32 %v1260_v34  ;;  %v2373_v40 = vunpack.i.h.bf16 %v2371_v39  ;;  %v2372_v41 = vunpack.i.l.bf16 %v2371_v39 }
 0x545   : > { %v2389_v28 = vpop.eup %2388  ;;  %v2223_v44 = vpack.c.bf16 %v2373_v40, %v2372_v41 }
 0x546   : > { %v1087_v29 = vsel %vm905_vm6, %v2389_v28, 0.0 }
 0x547   : > { %1088 = vadd.xlane.f32.xlu1 %v1087_v29 }
 0x54d   : > { %v2391_v36 = vpop.eup %2390 }
 0x54e   : > { %v1262_v37 = vsel %vm905_vm6, %v2391_v36, 0.0 }
 0x558   : > { %2375 = vrot.lane.b32.xlu1 %v3061_v32, %s2635_s27 }
 0x57c   : > { %1263 = vadd.xlane.f32.xlu1 %v1262_v37 }
 0x58d   : > { %1347 = vrot.lane.b32.xlu1 %v3067_v35, %s2635_s27  ;;  %s3306_s27 = sld [smem:[#allocation22_spill]] }
 0x593   : > { %v2002_v2 = vld [vmem:[%s3306_s27] ss:$0 sm:$0xff]  ;;  %s3310_s27 = sld [smem:[#allocation25_spill]] }
 0x599   : > { %s3205_s1 = scalar_lea.hbm %s3310_s27, %s2011_s29 }
 0x5d4   : > { %v1089_v38 = vpop.xlane.xlu1 %1088 }
 0x5d5   : > { %2392 = vrcp.f32 %v1089_v38 }
 0x5d8   : > { %v2376_v46 = vpop.permute.xlu1 %2375 }
 0x5d9   : > { %v2378_v35 = vunpack.i.h.bf16 %v2376_v46  ;;  %v2377_v48 = vunpack.i.l.bf16 %v2376_v46 }
 0x5db   : > { %v2226_v52 = vpack.c.bf16 %v2378_v35, %v2377_v48 }
 0x5df   : > { %v2393_v42 = vpop.eup %2392 }
 0x5e0   : > { %v1091_v43 = vmul.f32 %v2393_v42, %v2389_v28  ;;  %v1994_v28 = vld [vmem:[#allocation8] ss:$0 sm:$0xff] }
 0x5e2   : > { %2120 = vmatmul.mubr.msk.f32.vlgmr.msra.gmra.mrb[2].mxu1 %vm905_vm6, %v1091_v43  ;;  %v1092_v51 = vadd.f32 %v1091_v43, %v3090_v61 }
 0x5e3   : > { %2224 = vmatpush3.bf16.msra.mxu1 %v2223_v44  ;;  %2133 = vmatprep.mubr.msk.f32.mxu1 %vm2628_vm0, %v2629_v1 }
 0x5e4   : > { %2225 = vmatprep.subr.bf16.mxu1 %v2627_v0 }
 0x609   : > { %v1264_v47 = vpop.xlane.xlu1 %1263 }
 0x60a   : > { %2394 = vrcp.f32 %v1264_v47 }
 0x60d   : > { %v1348_v54 = vpop.permute.xlu1 %1347 }
 0x614   : > { %v2395_v49 = vpop.eup %2394 }
 0x615   : > { %v1266_v50 = vmul.f32 %v2395_v49, %v2391_v36 }
 0x617   : > { %2134 = vmatmul.mubr.msk.f32.vlgmr.msra.gmra.mrb[4].mxu1 %vm905_vm6, %v1266_v50  ;;  %v1267_v53 = vadd.f32 %v1266_v50, %v1092_v51  ;;  %v2000_v51 = vld [vmem:[#allocation10] ss:$0 sm:$0xff] }
 0x618   : > { %2228 = vmatpush3.bf16.xpose.msk.msra.mxu1 %vm3057_vm4, %v2226_v52  ;;  %2140 = vmatprep.mubr.msk.f32.mxu1 %vm2628_vm0, %v2629_v1 }
 0x619   : > { %2240 = vmatprep.subr.bf16.mxu1 %v2627_v0 }
 0x61f   : > { %2141 = vmatmul.mubr.msk.f32.vlgmr.msra.gmra.mrb[6].mxu1 %vm817_vm3, %v1348_v54 }
 0x620   : > { %2169 = vmatprep.mubr.msk.f32.mxu1 %vm2628_vm0, %v2629_v1 }
 0x6b5   : > { %v1168_v55 = vpop.f32.mrb[2].mxu1 }
 0x6b6   : > { %v2121_v56 = vpop.f32.mrb[3].mxu1 }
 0x6ea   : > { %v1343_v57 = vpop.f32.mrb[4].mxu1 }
 0x6eb   : > { %v2135_v58 = vpop.f32.mrb[5].mxu1 }
 0x6f2   : > { %v1425_v59 = vpop.f32.mrb[6].mxu1 }
 0x6f3   : > { %v1429_v60 = vmul.f32 0.35355338, %v1425_v59  ;;  %v2142_v61 = vpop.f32.mrb[7].mxu1 }
 0x6f5   : > { %v1430_v31 = vadd.f32 %v1429_v60, %v3083_v45 }
 0x6f7   : > { %v1431_v62 = vsel %vm905_vm6, %v1430_v31, -inf }
 0x6f8   : > { %1432 = vmax.xlane.f32.xlu0 %v1431_v62 }
 0x70e   : > { %2380 = vrot.lane.b32.xlu0 %v3061_v32, %s2636_s17 }
 0x712   : > { %1527 = vrot.lane.b32.xlu0 %v1343_v57, %s2637_s11  ;;  %s3304_s11 = sld [smem:[#allocation21_spill]] }
 0x718   : > { %v1666_v42 = vld [vmem:[%s3304_s11] sm:$0xff]  ;;  %v1668_v44 = vld [vmem:[%s3304_s11 + $0x10] sm:$0xff]  ;;  %v1669_v46 = vld [vmem:[%s3304_s11 + $0x18] sm:$0xff] }
 0x719   : > { %v2245_v47 = vpack.c.bf16 %v1669_v46, %v1668_v44 }
 0x785   : > { %v1433_v63 = vpop.xlane.xlu0 %1432 }
 0x786   : > { %v1434_v3 = vsub.f32 %v1430_v31, %v1433_v63 }
 0x788   : > { %v1435_v4 = vmul.f32 1.442695, %v1434_v3 }
 0x789   : > { %v2381_v5 = vpop.permute.xlu0 %2380 }
 0x78a   : > { %2396 = vpow2.f32 %v1435_v4  ;;  %v2383_v6 = vunpack.i.h.bf16 %v2381_v5  ;;  %v2382_v7 = vunpack.i.l.bf16 %v2381_v5 }
 0x78c   : > { %v2230_v9 = vpack.c.bf16 %v2383_v6, %v2382_v7 }
 0x78d   : > { %v1528_v24 = vpop.permute.xlu0 %1527 }
 0x78e   : > { %2231 = vmatpush3.bf16.msra.mxu0 %v2230_v9  ;;  %v2008_v9 = vld [vmem:[%s3307_s14] ss:$0 sm:$0xff] }
 0x78f   : > { %2232 = vmatprep.subr.bf16.mxu0 %v2627_v0 }
 0x794   : > { %v2397_v45 = vpop.eup %2396 }
 0x795   : > { %v1437_v10 = vsel %vm905_vm6, %v2397_v45, 0.0 }
 0x796   : > { %1438 = vadd.xlane.f32.xlu1 %v1437_v10  ;;  %v2009_v10 = vld [vmem:[%s3308_s26] ss:$0 sm:$0xff] }
 0x7a7   : > { %1523 = vrot.lane.b32.xlu1 %v1168_v55, %s2638_s12  ;;  %s2641_s12 = smov [#allocation11]  }
 0x7a8   : > { %s2550_s14 = sshll.u32 %s2641_s12, 4  ;;  %s2551_s14 = int_to_ptr.vmem [resolvable:$false] %s2550_s14 }
 0x7a9   : > { %s2552_s0 = scalar_lea.vmem %s2551_s14, 256 }
 0x823   : > { %v1439_v32 = vpop.xlane.xlu1 %1438 }
 0x824   : > { %2398 = vrcp.f32 %v1439_v32 }
 0x827   : > { %v1524_v21 = vpop.permute.xlu1 %1523 }
 0x828   : > { %v1534_v23 = vsel %vm817_vm3, %v3108_v8, %v1524_v21 }
 0x829   : > { %v1535_v25 = vsel %vm905_vm6, %v1534_v23, %v1528_v24 }
 0x82e   : > { %v2399_v11 = vpop.eup %2398 }
 0x82f   : > { %v1441_v12 = vmul.f32 %v2399_v11, %v2397_v45 }
 0x831   : > { %2148 = vmatmul.mubr.msk.f32.vlgmr.msra.gmra.mrb[10].mxu0 %vm905_vm6, %v1441_v12  ;;  %v1442_v13 = vadd.f32 %v1441_v12, %v1267_v53 }
 0x832   : > { %2158 = vmatprep.mubr.msk.f32.mxu0 %vm2628_vm0, %v2629_v1  ;;  %2235 = vmatpush3.bf16.xpose.msk.msra.mxu0 %vm2974_vm2, %v2233_v16  ;;  %v1542_v1 = vld [vmem:[%s3257_s7 + $0x18] sm:$0xff] }
 0x833   : > { %2236 = vmatprep.subr.bf16.mxu0 %v2627_v0  ;;  %v2237_v18 = vpack.c.bf16 %v1542_v1, %v1541_v17  ;;  %v1538_v41 = vmul.f32 0.25, %v1442_v13 }
 0x83a   : > { %2239 = vmatpush3.bf16.xpose.msk.msra.mxu0 %vm2974_vm2, %v2237_v18 }
 0x904   : > { %v1518_v19 = vpop.f32.mrb[10].mxu0 }
 0x905   : > { %1531 = vrot.lane.b32.xlu1 %v1518_v19, %s2639_s4  ;;  %v2149_v20 = vpop.f32.mrb[11].mxu0 }
 0x977   : > { %v1532_v26 = vpop.permute.xlu1 %1531 }
 0x978   : > { %v1537_v27 = vsel %vm1536_vm7, %v1535_v25, %v1532_v26 }
 0x979   : > { %2159 = vmatmul.mubr.msk.f32.vlgmr.msra.gmra.mrb[12].mxu0 %vm609_vm1, %v1537_v27 }
 0xa4c   : > { %v1631_v29 = vpop.f32.mrb[12].mxu0 }
 0xa4d   : > { %v1632_v30 = vadd.f32 %v1994_v28, %v1631_v29  ;;  %v2160_v33 = vpop.f32.mrb[13].mxu0 }
 0xa4f   : > { %v1635_v34 = vadd.f32 %v1632_v30, %v3038_v22  ;;  %v1667_v22 = vld [vmem:[%s3304_s11 + $0x8] sm:$0xff] }
 0xa50   : > { %v2241_v43 = vpack.c.bf16 %v1667_v22, %v1666_v42 }
 0xa51   : > { %v1638_v36 = vsel %vm609_vm1, %v1635_v34, 0.0 }
 0xa52   : > { %1639 = vadd.xlane.f32.xlu0 %v1638_v36  ;;  %2243 = vmatpush3.bf16.xpose.msk.msra.mxu1 %vm2974_vm2, %v2241_v43 }
 0xa53   : > { %2244 = vmatprep.subr.bf16.mxu1 %v2627_v0  ;;  %v2001_v0 = vld [vmem:[%s3305_s28] ss:$0 sm:$0xff]  ;;  %s1814_s28 = sshll.u32 %s585_s16, 4  ;;  %s3207_s28 = int_to_ptr.vmem [resolvable:$true] %s1814_s28 }
 0xa54   : > { %s2546_s17 = scalar_lea.vmem %s3207_s28, 128  ;;  %p2553_p3 = scmp.lt.s32.totalorder %s3207_s28, %s2551_s14 }
 0xa55   : > { %p2547_p6 = scmp.ne.s32.totalorder %s3207_s28, %s2546_s17  ;;  %p2554_p13 = scmp.lt.s32.totalorder %s2552_s0, %s2546_s17 }
 0xa57   : > { %p2548_p9 = pnand %p2547_p6, %p3311_p7  ;;  %p2555_p0 = por %p2554_p13, %p2553_p3 }
 0xa59   : > { %p2549_p4 = pneg %p2548_p9 }
 0xa5a   : > { %2247 = vmatpush3.bf16.xpose.msk.msra.mxu1 %vm2974_vm2, %v2245_v47 }
 0xa5b   : > { %p2556_p2 = pnand %p2555_p0, %p2549_p4 }
 0xadf   : > { %v1640_v37 = vpop.xlane.xlu0 %1639 }
 0xae0   : > { %v1642_v38 = vmul.f32 0.03125, %v1640_v37 }
 0xae2   : > { %v1643_v8 = vsub.f32 %v1635_v34, %v1642_v38 }
 0xae4   : > { %v1644_v39 = vmul.f32 %v1643_v8, %v1643_v8 }
 0xae6   : > { %v1645_v40 = vsel %vm609_vm1, %v1644_v39, 0.0 }
 0xae7   : > { %1646 = vadd.xlane.f32.xlu1 %v1645_v40 }
 0xaf8   : > { %1794 = vrot.lane.b32.xlu1 %v1538_v41, %s2640_s23 }
 0xb74   : > { %v1647_v35 = vpop.xlane.xlu1 %1646 }
 0xb75   : > { %v1648_v48 = vmul.f32 0.03125, %v1647_v35 }
 0xb77   : > { %v1649_v49 = vadd.f32 1e-05, %v1648_v48 }
 0xb78   : > { %v1795_v12 = vpop.permute.xlu1 %1794 }
 0xb79   : > { %2400 = vrsqrt.f32 %v1649_v49 }
 0xb83   : > { %v2401_v50 = vpop.eup %2400 }
 0xb84   : > { %v1651_v52 = vmul.f32 %v2401_v50, %v1643_v8 }
 0xb86   : > { %v1658_v53 = vmul.f32 %v2000_v51, %v1651_v52 }
 0xb88   : > { %v1665_v54 = vadd.f32 %v2001_v0, %v1658_v53 }
 0xb8a   : > { %2170 = vmatmul.mubr.msk.f32.vlgmr.msra.gmra.mrb[8].mxu1 %vm609_vm1, %v1665_v54 }
 0xc5d   : > { %v1758_v55 = vpop.f32.mrb[8].mxu1 }
 0xc5e   : > { %v1759_v56 = vadd.f32 %v2002_v2, %v1758_v55  ;;  %v2171_v57 = vpop.f32.mrb[9].mxu1 }
 0xc60   : > { %v1762_v58 = vmax.f32 %v1759_v56, 0.0 }
 0xc62   : > { %v1763_v59 = vadd.f32 %v1762_v58, %v1665_v54 }
 0xc64   : > { %v1766_v60 = vsel %vm609_vm1, %v1763_v59, 0.0 }
 0xc65   : > { %1767 = vadd.xlane.f32.xlu0 %v1766_v60 }
 0xcf2   : > { %v1768_v61 = vpop.xlane.xlu0 %1767 }
 0xcf3   : > { %v1769_v31 = vmul.f32 0.03125, %v1768_v61 }
 0xcf5   : > { %v1770_v62 = vsub.f32 %v1763_v59, %v1769_v31 }
 0xcf7   : > { %v1771_v63 = vmul.f32 %v1770_v62, %v1770_v62 }
 0xcf9   : > { %v1772_v3 = vsel %vm609_vm1, %v1771_v63, 0.0 }
 0xcfa   : > { %1773 = vadd.xlane.f32.xlu0 %v1772_v3 }
 0xd87   : > { %v1774_v4 = vpop.xlane.xlu0 %1773 }
 0xd88   : > { %v1775_v5 = vmul.f32 0.03125, %v1774_v4 }
 0xd8a   : > { %v1776_v6 = vadd.f32 1e-05, %v1775_v5 }
 0xd8c   : > { %2402 = vrsqrt.f32 %v1776_v6 }
 0xd96   : > { %v2403_v7 = vpop.eup %2402 }
 0xd97   : > { %v1778_v45 = vmul.f32 %v2403_v7, %v1770_v62 }
 0xd99   : > { %v1785_v32 = vmul.f32 %v2008_v9, %v1778_v45 }
 0xd9b   : > { %v1792_v11 = vadd.f32 %v2009_v10, %v1785_v32 }
 0xd9d   : > { %v1797_v13 = vsel %vm609_vm1, %v1792_v11, %v1795_v12 }
 0xd9e   : > { %1799 = vst.msk [vmem:[%s585_s16] sm:$0xff] %vm1798_vm8, %v1797_v13 }
 0xd9f   : > { %2559 = shalt.err (!%p2556_p2)
}
 0xda0   : > { %s2560_s6 = scalar_lea.hbm %s3205_s1, 128  ;;  %s2564_s29 = scalar_lea.hbm %s3310_s27, 256 }
 0xda1   : > { %p2561_p8 = scmp.ne.s32.totalorder %s3205_s1, %s2560_s6  ;;  %p2565_p12 = scmp.lt.u32.totalorder %s3205_s1, %s3310_s27 }
 0xda2   : > { %p2566_p1 = scmp.lt.u32.totalorder %s2564_s29, %s2560_s6  ;;  %p2568_p6 = scmp.lt.u32.totalorder %s2560_s6, %s3205_s1 }
 0xda3   : > { %p2562_p10 = pnand %p2561_p8, %p3311_p7 }
 0xda4   : > { %p2567_p5 = por %p2566_p1, %p2565_p12 }
 0xda5   : > { %p2563_p11 = pneg %p2562_p10 }
 0xda6   : > { %p2569_p9 = por %p2568_p6, %p2567_p5 }
 0xda8   : > { %p2570_p4 = pnand %p2569_p9, %p2563_p11 }
 0xdaa   : > { %2573 = shalt.err (!%p2570_p4)
}
 0xdab   : > { %2266 = dma.vmem_to_hbm [thread:$0]  (%p3311_p7), %s3207_s28, 128, %s3205_s1, %s1801_s24  }
 0xdac PF: > { %s1826_s4 = sand.u32 1, %s2608_s18   ;;  %p3312_p3 = scmp.ne.s32.totalorder %s3291_s15, 0 }
 0xdad   : > { %p3313_p13 = scmp.ge.s32.totalorder %s2620_s21, 2  ;;  %s1827_s23 = scalar_lea.sflag [#allocation4], %s1826_s4 }
 0xdaf   : > { %p2286_p0 = pnand %p3313_p13, %p3312_p3 }
 0xdb1   : > { %2603 = dma.done.wait (!%p2286_p0), %s1827_s23, 128  }
 0xdb2   : > { %2605 = vsyncadd (!%p2286_p0), %s1827_s23, 4294967168  ;;  %p30_p2 = scmp.ge.s32.totalorder %s2868_s30, 4   ;;  %s3314_s18 = smov %s2612_s19 }
 0xdb3   : > { %s3315_s19 = smov %s2616_s20  ;;  %s3316_s20 = smov %s2879_s22 }
 0xdb4   : > { %s3317_s21 = smov %s2868_s30  ;;  %32 = sbr.rel (!%p30_p2) target bundleno = 18 (0x12), region = 147 }
 0xdbb   :  { %1832 = vsyncpa [#allocation3], 1 }
 0xdbc   :  { %1834 = vsyncpa [#allocation3 + $0x1], 1 }
 0xdbd   :  { %1835 = vsyncpa [#allocation6], 1 }
 0xdbe   :  { %1836 = vsyncpa [#allocation9], 1 }
 0xdbf   :  { %1837 = vsyncpa [#allocation4], 1 }
 0xdc0   :  { %1839 = vsyncpa [#allocation4 + $0x1], 1 }

</bundles_post_ra>
